<compile_context>
chip_gen: v7x
topology: tpu7x:2x2x1
jax: 0.10.0
libtpu: 0.0.40
codegen_flags: <defaults>
</compile_context>

<pallas_src>
import math
from functools import partial

import jax
import jax.numpy as jnp
from jax.experimental import pallas as pl
from jax.experimental.pallas import tpu as pltpu


def _round_up(a: int, b: int) -> int:
    return (a + b - 1) // b * b


# --------------------------------------------------------------------------------------
# Kernel: one row-tile of  y = x @ [W^T | A]  ->  split  ->  dense + ((xA) @ B) * scale + b
# --------------------------------------------------------------------------------------
def lora_linear_kernel(scaling, dout_p, x_ref, wa_ref, lb_ref, b_ref, o_ref):
    f32 = jnp.float32

    x = x_ref[...]                                            # (bm, Din)        bf16
    wa = wa_ref[...]                                          # (Din, Dout_p+r)  bf16

    # Single stacked MXU matmul: dense projection and LoRA down-projection together.
    fused = jnp.dot(x, wa, preferred_element_type=f32)        # (bm, Dout_p + r) f32

    dense = fused[:, :dout_p]                                 # (bm, Dout_p)  — lane-aligned slice
    xa = fused[:, dout_p:]                                    # (bm, r)

    # LoRA up-projection: (x @ A) @ B   (low-rank ordering, r x Dout weight only)
    lora = jnp.dot(xa.astype(jnp.bfloat16), lb_ref[...],
                   preferred_element_type=f32)                # (bm, Dout_p) f32

    o_ref[...] = dense + b_ref[...] + lora * scaling


# --------------------------------------------------------------------------------------
# Wrapper
# --------------------------------------------------------------------------------------
def lora_linear(x, w, b, lora_a, lora_b, *, alpha=16, block_m=256):
    """x: (..., Din); w: (Dout, Din) torch layout; b: (Dout,); lora_a: (Din, r); lora_b: (r, Dout)."""
    f32, bf16 = jnp.float32, jnp.bfloat16

    rank = lora_a.shape[1]
    scaling = float(alpha) / float(rank)

    lead_shape = x.shape[:-1]
    din = x.shape[-1]
    dout = w.shape[0]
    m = int(math.prod(lead_shape)) if lead_shape else 1

    # Lane-dense output padding (multiple of 128).
    dout_p = _round_up(max(dout, 128), 128)

    # Pack [W^T | A] into one bf16 slab; pad bias / LoRA-B columns to Dout_p.
    w_t = jnp.zeros((din, dout_p), f32).at[:, :dout].set(w.T)
    wa = jnp.concatenate([w_t, lora_a.astype(f32)], axis=1).astype(bf16)   # (Din, Dout_p + r)
    lb = jnp.zeros((rank, dout_p), f32).at[:, :dout].set(lora_b).astype(bf16)
    bias = jnp.zeros((1, dout_p), f32).at[0, :dout].set(b)

    # Row tiling: pad rows to a sublane/tile multiple.
    xf = x.reshape(m, din).astype(bf16)
    if m > block_m:
        bm = block_m                      # multiple of 8
        m_p = _round_up(m, bm)
    else:
        bm = m_p = _round_up(m, 8)
    if m_p != m:
        xf = jnp.pad(xf, ((0, m_p - m), (0, 0)))

    grid = (m_p // bm,)

    out = pl.pallas_call(
        partial(lora_linear_kernel, scaling, dout_p),
        out_shape=jax.ShapeDtypeStruct((m_p, dout_p), f32),
        grid_spec=pltpu.PrefetchScalarGridSpec(
            num_scalar_prefetch=0,
            grid=grid,
            in_specs=[
                pl.BlockSpec((bm, din), lambda i: (i, 0)),              # x rows (tiled)
                pl.BlockSpec((din, dout_p + rank), lambda i: (0, 0)),   # [W^T | A] slab (resident)
                pl.BlockSpec((rank, dout_p), lambda i: (0, 0)),         # LoRA B (resident)
                pl.BlockSpec((1, dout_p), lambda i: (0, 0)),            # bias (resident)
            ],
            out_specs=pl.BlockSpec((bm, dout_p), lambda i: (i, 0)),
        ),
        compiler_params=pltpu.CompilerParams(
            dimension_semantics=("parallel",),      # shard row tiles across TCs (v7x)
        ),
    )(xf, wa, lb, bias)

    return out[:m, :dout].reshape(*lead_shape, dout)


# --------------------------------------------------------------------------------------
# Pure-JAX f32 reference (same math as the PyTorch module)
# --------------------------------------------------------------------------------------
def lora_linear_ref(x, w, b, lora_a, lora_b, *, alpha=16):
    scaling = float(alpha) / float(lora_a.shape[1])
    return x @ w.T + b + (x @ (lora_a @ lora_b)) * scaling


# --------------------------------------------------------------------------------------
if __name__ == "__main__":
    key = jax.random.PRNGKey(0)
    kx, kw, kb, ka, kB = jax.random.split(key, 5)

    # Classification-head-like shapes: (batch, in_features) -> (batch, out_features)
    batch, in_features, out_features = 16, 32, 10
    rank, alpha = 8, 16

    x = jax.random.normal(kx, (batch, in_features), jnp.float32)
    w = 0.08 * jax.random.normal(kw, (out_features, in_features), jnp.float32)
    b = 0.08 * jax.random.normal(kb, (out_features,), jnp.float32)
    lora_a = 0.08 * jax.random.normal(ka, (in_features, rank), jnp.float32)
    # TODO(synk): reference initializes lora_B to zeros; use non-zero values so the LoRA path
    #             is exercised (forward math is identical for any parameter values).
    lora_b = 0.08 * jax.random.normal(kB, (rank, out_features), jnp.float32)

    y = jax.block_until_ready(lora_linear(x, w, b, lora_a, lora_b, alpha=alpha))
    y_ref = jax.block_until_ready(lora_linear_ref(x, w, b, lora_a, lora_b, alpha=alpha))

    max_err = float(jnp.max(jnp.abs(y - y_ref)))
    assert max_err < 1e-2, f"mismatch vs reference: {max_err}"

    print("KERNEL_OK")
</pallas_src>

<mosaic_0001>
module attributes {stable_mosaic.version = 11 : i64} {
  func.func @lora_linear_kernel(%arg0: i32, %arg1: memref<16x32xbf16, #tpu.memory_space<vmem>>, %arg2: memref<32x136xbf16, #tpu.memory_space<vmem>>, %arg3: memref<8x128xbf16, #tpu.memory_space<vmem>>, %arg4: memref<1x128xf32, #tpu.memory_space<vmem>>, %arg5: memref<16x128xf32, #tpu.memory_space<vmem>>) attributes {dimension_semantics = [#tpu.dimension_semantics<parallel>], iteration_bounds = array<i64: 1>, scalar_prefetch = 0 : i64, scratch_operands = 0 : i64, tpu.core_type = #tpu.core_type<tc>, window_params = [{transform_indices = @transform_0, window_bounds = array<i64: 16, 32>}, {pipeline_mode = #tpu.pipeline_mode<synchronous>, transform_indices = @transform_1, window_bounds = array<i64: 32, 136>}, {pipeline_mode = #tpu.pipeline_mode<synchronous>, transform_indices = @transform_2, window_bounds = array<i64: 8, 128>}, {pipeline_mode = #tpu.pipeline_mode<synchronous>, transform_indices = @transform_3, window_bounds = array<i64: 1, 128>}, {transform_indices = @transform_4, window_bounds = array<i64: 16, 128>}]} {
    %c0 = arith.constant 0 : index
    %c0_0 = arith.constant 0 : index
    %0 = vector.load %arg1[%c0, %c0_0] : memref<16x32xbf16, #tpu.memory_space<vmem>>, vector<16x32xbf16>
    %c0_1 = arith.constant 0 : index
    %c0_2 = arith.constant 0 : index
    %1 = vector.load %arg2[%c0_1, %c0_2] : memref<32x136xbf16, #tpu.memory_space<vmem>>, vector<32x136xbf16>
    %cst = arith.constant dense<0.000000e+00> : vector<16x136xf32>
    %2 = tpu.matmul %0, %1, %cst {dimension_numbers = #tpu.dot_dimension_numbers<[1], [0], [0], [1], [0, 0, 1, 1], [], []>} : vector<16x32xbf16>, vector<32x136xbf16>, vector<16x136xf32> -> vector<16x136xf32>
    %3 = vector.extract_strided_slice %2 {offsets = [0, 0], sizes = [16, 128], strides = [1, 1]} : vector<16x136xf32> to vector<16x128xf32>
    %4 = vector.extract_strided_slice %2 {offsets = [0, 128], sizes = [16, 8], strides = [1, 1]} : vector<16x136xf32> to vector<16x8xf32>
    %5 = arith.truncf %4 : vector<16x8xf32> to vector<16x8xbf16>
    %c0_3 = arith.constant 0 : index
    %c0_4 = arith.constant 0 : index
    %6 = vector.load %arg3[%c0_3, %c0_4] : memref<8x128xbf16, #tpu.memory_space<vmem>>, vector<8x128xbf16>
    %cst_5 = arith.constant dense<0.000000e+00> : vector<16x128xf32>
    %7 = tpu.matmul %5, %6, %cst_5 {dimension_numbers = #tpu.dot_dimension_numbers<[1], [0], [0], [1], [0, 0, 1, 1], [], []>} : vector<16x8xbf16>, vector<8x128xbf16>, vector<16x128xf32> -> vector<16x128xf32>
    %c0_6 = arith.constant 0 : index
    %c0_7 = arith.constant 0 : index
    %8 = vector.load %arg4[%c0_6, %c0_7] : memref<1x128xf32, #tpu.memory_space<vmem>>, vector<1x128xf32>
    %9 = vector.broadcast %8 : vector<1x128xf32> to vector<16x128xf32>
    %10 = arith.addf %3, %9 : vector<16x128xf32>
    %cst_8 = arith.constant 2.000000e+00 : f32
    %11 = vector.broadcast %cst_8 : f32 to vector<16x128xf32>
    %12 = arith.mulf %7, %11 : vector<16x128xf32>
    %13 = arith.addf %10, %12 : vector<16x128xf32>
    %c0_9 = arith.constant 0 : index
    %c0_10 = arith.constant 0 : index
    %14 = vector.load %arg5[%c0_9, %c0_10] : memref<16x128xf32, #tpu.memory_space<vmem>>, vector<16x128xf32>
    tpu.vector_store %arg5[%c0_9, %c0_10], %13 {strides = array<i32>} : memref<16x128xf32, #tpu.memory_space<vmem>>, vector<16x128xf32>,
    return
  }
  func.func @transform_0(%arg0: i32) -> (i32, i32) {
    %c0_i32 = arith.constant 0 : i32
    %c0_i32_0 = arith.constant 0 : i32
    return %arg0, %c0_i32 : i32, i32
  }
  func.func @transform_1(%arg0: i32) -> (i32, i32) {
    %c0_i32 = arith.constant 0 : i32
    %c0_i32_0 = arith.constant 0 : i32
    %c0_i32_1 = arith.constant 0 : i32
    return %c0_i32, %c0_i32_0 : i32, i32
  }
  func.func @transform_2(%arg0: i32) -> (i32, i32) {
    %c0_i32 = arith.constant 0 : i32
    %c0_i32_0 = arith.constant 0 : i32
    %c0_i32_1 = arith.constant 0 : i32
    return %c0_i32, %c0_i32_0 : i32, i32
  }
  func.func @transform_3(%arg0: i32) -> (i32, i32) {
    %c0_i32 = arith.constant 0 : i32
    %c0_i32_0 = arith.constant 0 : i32
    %c0_i32_1 = arith.constant 0 : i32
    return %c0_i32, %c0_i32_0 : i32, i32
  }
  func.func @transform_4(%arg0: i32) -> (i32, i32) {
    %c0_i32 = arith.constant 0 : i32
    %c0_i32_0 = arith.constant 0 : i32
    return %arg0, %c0_i32 : i32, i32
  }
}

</mosaic_0001>

<bundles_post_ra>
// kernel: tpu_custom_call.1
= control target key start
LH: loop header
LB: loop body
LE: loop exit
PB: predicated region body
PF: predicated region fallthrough
CT: control target
= control target key end

     0   :  { %9 = vsyncpa [#allocation3], 0  ;;  %s397_s0 = inlined_call_operand.hbm [shape: bf16[16,32], index: 0, kind: input, shape index: {}]   ;;  %s398_s1 = inlined_call_operand.hbm [shape: bf16[32,136], index: 1, kind: input, shape index: {}]   ;;  %s399_s2 = inlined_call_operand.vmem [shape: bf16[8,128], index: 2, kind: input, shape index: {}]   ;;  %s400_s3 = inlined_call_operand.vmem [shape: f32[1,128], index: 3, kind: input, shape index: {}]   ;;  %s401_s4 = inlined_call_operand.hbm [shape: f32[16,128], index: 4, kind: output, shape index: {}]  }
   0x1   :  { %10 = vsyncpa [#allocation6], 0 }
   0x2   :  { %11 = vsyncpa [#allocation4], 0  ;;  %s314_s15 = smov [#allocation2]   ;;  %s242_s19 = scalar_lea.hbm %s397_s0, 128 }
   0x3   :  { %s17_s16 = sshll.u32 %s314_s15, 4  ;;  %p243_p0 = scmp.ne.s32.totalorder %s397_s0, %s242_s19  ;;  %s18_s16 = int_to_ptr.vmem [resolvable:$true] %s17_s16 }
   0x4   :  { %p246_p1 = scmp.lt.u32.totalorder %s242_s19, %s397_s0 }
   0x6   :  { %p248_p2 = pnand %p246_p1, %p243_p0 }
   0x8   :  { %251 = shalt.err (!%p248_p2)
}
   0x9   :  { %s252_s24 = scalar_lea.vmem %s18_s16, 128  ;;  %p257_p4 = scmp.lt.s32.totalorder %s18_s16, %s18_s16 }
   0xa   :  { %p253_p3 = scmp.ne.s32.totalorder %s18_s16, %s252_s24  ;;  %p258_p5 = scmp.lt.s32.totalorder %s252_s24, %s252_s24 }
   0xc   :  { %p259_p6 = por %p258_p5, %p257_p4 }
   0xe   :  { %p260_p7 = pnand %p259_p6, %p253_p3 }
  0x10   :  { %263 = shalt.err (!%p260_p7)
}
  0x11   :  { %s315_s25 = smov 64   ;;  %s316_s26 = smov 4  }
  0x12   :  { %23 = dma.hbm_to_vmem [thread:$0]  %s397_s0, 128, %s18_s16, [#allocation3], %s315_s25, %s315_s25, %s316_s26  }
  0x13   :  { %s317_s29 = smov [#allocation5]   ;;  %s264_s7 = scalar_lea.hbm %s398_s1, 512 }
  0x14   :  { %s29_s30 = sshll.u32 %s317_s29, 4  ;;  %p265_p8 = scmp.ne.s32.totalorder %s398_s1, %s264_s7  ;;  %s30_s30 = int_to_ptr.vmem [resolvable:$true] %s29_s30 }
  0x15   :  { %p268_p9 = scmp.lt.u32.totalorder %s264_s7, %s398_s1 }
  0x17   :  { %p270_p10 = pnand %p268_p9, %p265_p8 }
  0x19   :  { %273 = shalt.err (!%p270_p10)
}
  0x1a   :  { %s274_s12 = scalar_lea.vmem %s30_s30, 512  ;;  %p279_p12 = scmp.lt.s32.totalorder %s30_s30, %s30_s30 }
  0x1b   :  { %p275_p11 = scmp.ne.s32.totalorder %s30_s30, %s274_s12  ;;  %p280_p13 = scmp.lt.s32.totalorder %s274_s12, %s274_s12 }
  0x1d   :  { %p281_p0 = por %p280_p13, %p279_p12 }
  0x1f   :  { %p282_p1 = pnand %p281_p0, %p275_p11 }
  0x21   :  { %285 = shalt.err (!%p282_p1)
}
  0x22   :  { %s318_s0 = smov 128   ;;  %s319_s13 = smov 8  }
  0x23   :  { %35 = dma.hbm_to_vmem [thread:$0]  %s398_s1, 512, %s30_s30, [#allocation6], %s318_s0, %s318_s0, %s319_s13  }
  0x24   :  { %308 = dma.done.wait [#allocation3], 128  }
  0x25   :  { %309 = vsyncadd [#allocation3], 4294967168 }
  0x26   :  { %310 = dma.done.wait [#allocation6], 512  }
  0x27   :  { %311 = vsyncadd [#allocation6], 4294966784  ;;  %v320_v0 = vmov 0   ;;  %v235_v1 = vld [vmem:[#allocation5 + $0x4] ss:$8 sps:$4 sm:$0xff]   ;;  %v241_v5 = vld [vmem:[#allocation2] sm:$0xff]  }
  0x28   :  { %114 = vmatprep.mubr.bf16.mxu0 %v320_v0  ;;  %v237_v2 = vld [vmem:[#allocation5] ss:$8 sps:$4 sm:$0xff]   ;;  %82 = vmatprep.subr.bf16.mxu0 %v235_v1  ;;  %v238_v3 = vld [vmem:[#allocation5 + $0x14] ss:$8 sps:$4 sm:$0xff]   ;;  %v240_v4 = vld [vmem:[#allocation5 + $0x10] ss:$8 sps:$4 sm:$0xff]  }
  0x29   :  { %83 = vmatpush1.bf16.msra.mxu0 %v237_v2  ;;  %vm78_vm0 = vcmask 261120   ;;  %v126_v6 = vld [vmem:[%s399_s2] sm:$0xf]  ;;  %vm131_vm1 = vcmask 1043456   ;;  %v321_v7 = vmov 0.0   ;;  %vm322_vm2 = vmmov 0  }
  0x2a   :  { %84 = vmatprep.subr.bf16.mxu0 %v238_v3  ;;  %219 = vmatprep.subr.bf16.mxu1 %v321_v7  ;;  %v133_v8 = vsel %vm131_vm1, %v126_v6, 0  ;;  %vm127_vm3 = vcmask 64512   ;;  %v216_v14 = vld [vmem:[%s400_s3] ss:$0 sm:$0xff]  ;;  %s323_s2 = smov [#allocation7]  }
  0x2b   :  { %220 = vmatpush3.bf16.msra.mxu1 %v133_v8  ;;  %221 = vmatprep.mubr.msk.bf16.mxu1 %vm322_vm2, %v321_v7  ;;  %s196_s19 = sshll.u32 %s323_s2, 4  ;;  %s197_s19 = int_to_ptr.vmem [resolvable:$true] %s196_s19 }
  0x2c   :  { %s286_s20 = scalar_lea.vmem %s197_s19, 256  ;;  %p291_p3 = scmp.lt.s32.totalorder %s197_s19, %s197_s19 }
  0x2d   :  { %85 = vmatpush1.bf16.msra.mxu0 %v240_v4  ;;  %p287_p2 = scmp.ne.s32.totalorder %s197_s19, %s286_s20  ;;  %p292_p4 = scmp.lt.s32.totalorder %s286_s20, %s286_s20 }
  0x2f   :  { %p293_p5 = por %p292_p4, %p291_p3 }
  0x30   :  { %214 = vmatmul.mubr.msk.bf16.vlgmr.msra.gmra.mrb[0].mxu0 %vm78_vm0, %v241_v5 }
  0x31   :  { %p294_p6 = pnand %p293_p5, %p287_p2 }
 0x103   :  { %v116_v9 = vpop.f32.mrb[0].mxu0 }
 0x104   :  { %v118_v10 = vpop.f32.mrb[1].mxu0  ;;  %v183_v16 = vadd.f32 %v216_v14, %v116_v9 }
 0x105   :  { %v120_v11 = vpop.f32.mrb[2].mxu0 }
 0x106   :  { %v122_v12 = vpop.f32.mrb[3].mxu0  ;;  %v184_v20 = vadd.f32 %v216_v14, %v120_v11 }
 0x107   :  { %v125_v13 = vpack.c.bf16 %v122_v12, %v118_v10 }
 0x109   :  { %222 = vmatmul.mubr.msk.bf16.vlgmr.msra.gmra.mrb[0].mxu1 %vm127_vm3, %v125_v13 }
 0x1dc   :  { %v169_v15 = vpop.f32.mrb[0].mxu1 }
 0x1dd   :  { %v185_v17 = vmul.f32 2.0, %v169_v15  ;;  %v223_v18 = vpop.f32.mrb[1].mxu1 }
 0x1de   :  { %v172_v19 = vpop.f32.mrb[2].mxu1 }
 0x1df   :  { %v187_v21 = vadd.f32 %v185_v17, %v183_v16  ;;  %v186_v22 = vmul.f32 2.0, %v172_v19  ;;  %v224_v23 = vpop.f32.mrb[3].mxu1 }
 0x1e1   :  { %189 = vst [vmem:[#allocation7] sm:$0xff] %v187_v21  ;;  %v188_v24 = vadd.f32 %v186_v22, %v184_v20 }
 0x1e3   :  { %190 = vst [vmem:[#allocation7 + $0x8] sm:$0xff] %v188_v24 }
 0x1e4   :  { %297 = shalt.err (!%p294_p6)
}
 0x1e5   :  { %s298_s22 = scalar_lea.hbm %s401_s4, 256 }
 0x1e6   :  { %p299_p7 = scmp.ne.s32.totalorder %s401_s4, %s298_s22  ;;  %p302_p8 = scmp.lt.u32.totalorder %s298_s22, %s401_s4 }
 0x1e8   :  { %p304_p9 = pnand %p302_p8, %p299_p7 }
 0x1ea   :  { %307 = shalt.err (!%p304_p9)
}
 0x1eb   :  { %202 = dma.vmem_to_hbm [thread:$0]  %s197_s19, 256, %s401_s4, [#allocation4], %s318_s0, %s318_s0, %s319_s13  }
 0x1ec   :  { %312 = dma.done.wait [#allocation4], 256  }
 0x1ed   :  { %313 = vsyncadd [#allocation4], 4294967040 }
 0x1ee   :  { %206 = vsyncpa [#allocation3], 1 }
 0x1ef   :  { %207 = vsyncpa [#allocation6], 1 }
 0x1f0   :  { %208 = vsyncpa [#allocation4], 1 }

</bundles_post_ra>
